<compile_context>
chip_gen: v6e
topology: v6e:2x2x1
jax: 0.10.0
libtpu: 0.0.40
codegen_flags: <defaults>
</compile_context>

<pallas_src>
import math

import jax
import jax.numpy as jnp
from jax.experimental import pallas as pl
from jax.experimental.pallas import tpu as pltpu


def _num_tensorcores():
    """Best-effort count of TensorCores per chip (2 on v7x, else 1)."""
    try:
        info = pltpu.get_tpu_info()
        for attr in ("num_cores", "core_count", "num_tensorcores"):
            v = getattr(info, attr, None)
            if isinstance(v, int) and 1 <= v <= 8:
                return v
    except Exception:
        pass
    try:
        kind = (jax.devices()[0].device_kind or "").lower()
        if "v7" in kind:
            return 2
    except Exception:
        pass
    return 1


def _make_dice_kernel(tile, d_total, tiles_per_split, num_tiles, needs_mask):
    def kernel(x_ref, t_ref, oxy_ref, osum_ref):
        p = pl.program_id(0)
        d = pl.program_id(1)

        # Init the resident per-split accumulators on the first D step.
        @pl.when(d == 0)
        def _():
            oxy_ref[...] = jnp.zeros_like(oxy_ref)
            osum_ref[...] = jnp.zeros_like(osum_ref)

        x = x_ref[...].astype(jnp.float32)
        t = t_ref[...].astype(jnp.float32)

        def accumulate(xv, tv):
            oxy_ref[0] += jnp.sum(xv * tv, axis=1, keepdims=True)
            osum_ref[0] += jnp.sum(xv + tv, axis=1, keepdims=True)

        if not needs_mask:
            # Hot path: every tile is full and in range — no iota/where.
            accumulate(x, t)
        else:
            tile_idx = p * tiles_per_split + d
            col0 = tile_idx * tile
            in_range = tile_idx < num_tiles          # clamped (split) tiles skip
            is_partial = (col0 + tile) > d_total     # only the true tail tile

            @pl.when(jnp.logical_and(in_range, jnp.logical_not(is_partial)))
            def _():
                accumulate(x, t)

            @pl.when(jnp.logical_and(in_range, is_partial))
            def _():
                rows = x.shape[0]
                lane = jax.lax.broadcasted_iota(jnp.int32, (rows, tile), 1)
                valid = (col0 + lane) < d_total
                accumulate(jnp.where(valid, x, 0.0), jnp.where(valid, t, 0.0))

    return kernel


def binary_dice_loss(inputs, targets, *, target_step_bytes=2 << 20,
                     lane_tile_cap=32768, max_splits=None):
    """Pallas equivalent of BinaryDiceLoss.forward(input, targets)."""
    N = targets.shape[0]
    x = inputs.reshape(N, -1)    # keep native dtype on the wire
    t = targets.reshape(N, -1)
    D = x.shape[1]
    assert t.shape[1] == D, "input and target must flatten to the same size"

    # --- sublane packing: (N, D) -> (N*S, D/S) to fill the 8 vreg sublanes.
    S = 1
    if N % 8 != 0:
        want = 8 // math.gcd(N, 8)
        for s in [want] + [c for c in (4, 2) if c < want]:
            if s > 1 and D % s == 0:
                S = s
                break
    R = N * S
    Dr = D // S
    x = x.reshape(R, Dr)
    t = t.reshape(R, Dr)

    isx = x.dtype.itemsize
    ist = t.dtype.itemsize

    # --- lane tile: dtype-aware, targets >= target_step_bytes of wire traffic
    # per grid step, capped by a conservative VMEM budget (2 double-buffered
    # native-dtype inputs + in-kernel f32 temporaries).
    bytes_per_col = R * (isx + ist)                       # wire bytes / lane col
    vmem_budget = 14 << 20
    bytes_per_128 = 128 * (2 * bytes_per_col + 6 * R * 4)
    max_tile = max(128, (vmem_budget // bytes_per_128) * 128)
    cols_for_target = max(1, target_step_bytes // bytes_per_col)
    want_tile = ((cols_for_target + 127) // 128) * 128
    lane_tile_cap = max(128, (lane_tile_cap // 128) * 128)
    tile = max(128, min(want_tile, lane_tile_cap, max_tile))
    if Dr <= tile:
        tile = Dr                                         # single full-width tile

    num_tiles = pl.cdiv(Dr, tile)

    # --- split the D reduction across TensorCores only where it helps (v7x).
    n_cores = _num_tensorcores()
    if max_splits is None:
        max_splits = n_cores
    n_splits = max(1, min(max_splits, num_tiles))
    tiles_per_split = pl.cdiv(num_tiles, n_splits)
    needs_mask = (n_splits * tiles_per_split * tile) != Dr
    use_core_parallel = (n_splits > 1) and (n_cores > 1)

    def in_map(p, d):
        # Clamp so the DMA never indexes past the last real tile; out-of-range
        # tiles (only possible when splitting) contribute nothing in-kernel.
        return (0, jnp.minimum(p * tiles_per_split + d, num_tiles - 1))

    out_map = lambda p, d: (p, 0, 0)

    kernel = _make_dice_kernel(tile, Dr, tiles_per_split, num_tiles, needs_mask)

    # VMEM footprint (with headroom) -> explicit scoped-VMEM limit.
    in_buf_bytes = 2 * R * tile * (isx + ist)             # double-buffered inputs
    tmp_bytes = 6 * R * tile * 4                          # generous f32 temporaries
    footprint = in_buf_bytes + tmp_bytes + (1 << 20)
    vmem_limit = int(min(max(2 * footprint, 16 << 20), 32 << 20))

    bytes_accessed = int(x.size * isx + t.size * ist + 2 * n_splits * R * 4)
    cost = pl.CostEstimate(flops=int(3 * R * Dr), transcendentals=0,
                           bytes_accessed=bytes_accessed)

    out_shape = (
        jax.ShapeDtypeStruct((n_splits, R, 1), jnp.float32),   # sum(x*t)
        jax.ShapeDtypeStruct((n_splits, R, 1), jnp.float32),   # sum(x+t)
    )
    grid_spec = pltpu.PrefetchScalarGridSpec(
        num_scalar_prefetch=0,
        grid=(n_splits, tiles_per_split),
        in_specs=[
            pl.BlockSpec((R, tile), in_map),
            pl.BlockSpec((R, tile), in_map),
        ],
        out_specs=[
            pl.BlockSpec((1, R, 1), out_map),
            pl.BlockSpec((1, R, 1), out_map),
        ],
    )

    def _run(split_sem):
        return pl.pallas_call(
            kernel,
            out_shape=out_shape,
            grid_spec=grid_spec,
            compiler_params=pltpu.CompilerParams(
                dimension_semantics=(split_sem, "arbitrary"),
                vmem_limit_bytes=vmem_limit,
            ),
            cost_estimate=cost,
        )(x, t)

    if use_core_parallel:
        try:
            part_xy, part_sum = _run(pltpu.CORE_PARALLEL)
        except Exception:
            # Safe fallback if CORE_PARALLEL does not lower on this chip.
            part_xy, part_sum = _run("arbitrary")
    else:
        part_xy, part_sum = _run("arbitrary")

    # Tiny epilogue: combine splits and sub-rows, then dice + mean.
    sxy = jnp.sum(part_xy[..., 0], axis=0).reshape(N, S).sum(axis=1)    # (N,)
    ssum = jnp.sum(part_sum[..., 0], axis=0).reshape(N, S).sum(axis=1)  # (N,)
    smooth = 1.0
    dice = (2.0 * sxy + smooth) / (ssum + smooth + 1e-05)
    return jnp.mean(1.0 - dice)


def _reference(inputs, targets):
    N = targets.shape[0]
    smooth = 1.0
    xf = inputs.reshape(N, -1).astype(jnp.float32)
    tf = targets.reshape(N, -1).astype(jnp.float32)
    inter = (xf * tf).sum(1)
    dice = (2.0 * inter + smooth) / (xf.sum(1) + tf.sum(1) + smooth + 1e-05)
    return jnp.mean(1.0 - dice)


if __name__ == "__main__":
    key = jax.random.PRNGKey(0)
    k1, k2, k3, k4, k5, k6 = jax.random.split(key, 6)

    # 1) Primary: NCHW segmentation-style inputs, like the PyTorch module.
    x = jax.random.uniform(k1, (2, 4, 16, 16), dtype=jnp.float32)            # preds in [0,1]
    y = (jax.random.uniform(k2, (2, 4, 16, 16)) > 0.5).astype(jnp.float32)   # binary targets
    loss = binary_dice_loss(x, y)
    jax.block_until_ready(loss)
    ref = _reference(x, y)
    assert jnp.allclose(loss, ref, rtol=1e-4, atol=1e-4), (loss, ref)

    # 2) Odd-shaped bf16 preds + f32 targets: native mixed-dtype wire,
    #    single full-width tile (odd D defeats sublane packing).
    x2 = jax.random.uniform(k3, (2, 3, 37, 53), dtype=jnp.float32).astype(jnp.bfloat16)
    y2 = (jax.random.uniform(k4, (2, 3, 37, 53)) > 0.5).astype(jnp.float32)
    loss2 = binary_dice_loss(x2, y2)
    jax.block_until_ready(loss2)
    ref2 = _reference(x2, y2)
    assert jnp.allclose(loss2, ref2, rtol=1e-4, atol=1e-4), (loss2, ref2)

    # 3) Force small tiles, a masked partial tail tile and a 2-way split of
    #    the reduction axis (safe serial lowering on 1-TC chips) to exercise
    #    the clamp/mask/accumulate paths and the split-combining epilogue.
    x3 = jax.random.uniform(k5, (2, 8, 33, 37), dtype=jnp.float32)
    y3 = (jax.random.uniform(k6, (2, 8, 33, 37)) > 0.5).astype(jnp.float32)
    loss3 = binary_dice_loss(x3, y3, target_step_bytes=1 << 14,
                             lane_tile_cap=512, max_splits=2)
    jax.block_until_ready(loss3)
    ref3 = _reference(x3, y3)
    assert jnp.allclose(loss3, ref3, rtol=1e-4, atol=1e-4), (loss3, ref3)

    print("KERNEL_OK")
</pallas_src>

<mosaic_0001>
module attributes {stable_mosaic.version = 11 : i64} {
  func.func @kernel(%arg0: i32, %arg1: i32, %arg2: memref<8x256xf32, #tpu.memory_space<vmem>>, %arg3: memref<8x256xf32, #tpu.memory_space<vmem>>, %arg4: memref<1x8x1xf32, #tpu.memory_space<vmem>>, %arg5: memref<1x8x1xf32, #tpu.memory_space<vmem>>) attributes {dimension_semantics = [#tpu.dimension_semantics<arbitrary>, #tpu.dimension_semantics<arbitrary>], iteration_bounds = array<i64: 1, 1>, scalar_prefetch = 0 : i64, scratch_operands = 0 : i64, tpu.core_type = #tpu.core_type<tc>, window_params = [{transform_indices = @transform_0, window_bounds = array<i64: 8, 256>}, {transform_indices = @transform_1, window_bounds = array<i64: 8, 256>}, {transform_indices = @transform_2, window_bounds = array<i64: 1, 8, 1>}, {transform_indices = @transform_3, window_bounds = array<i64: 1, 8, 1>}]} {
    %c0_i32 = arith.constant 0 : i32
    %0 = arith.cmpi eq, %arg1, %c0_i32 : i32
    %1 = arith.extui %0 : i1 to i32
    %c0_i32_0 = arith.constant 0 : i32
    %2 = arith.cmpi ne, %1, %c0_i32_0 : i32
    scf.if %2 {
      %cst_17 = arith.constant 0.000000e+00 : f32
      %23 = vector.broadcast %cst_17 : f32 to vector<1x8x1xf32>
      %c0_18 = arith.constant 0 : index
      %c0_19 = arith.constant 0 : index
      %c0_20 = arith.constant 0 : index
      %24 = vector.load %arg4[%c0_18, %c0_19, %c0_20] : memref<1x8x1xf32, #tpu.memory_space<vmem>>, vector<1x8x1xf32>
      tpu.vector_store %arg4[%c0_18, %c0_19, %c0_20], %23 {strides = array<i32>} : memref<1x8x1xf32, #tpu.memory_space<vmem>>, vector<1x8x1xf32>,
      %cst_21 = arith.constant 0.000000e+00 : f32
      %25 = vector.broadcast %cst_21 : f32 to vector<1x8x1xf32>
      %c0_22 = arith.constant 0 : index
      %c0_23 = arith.constant 0 : index
      %c0_24 = arith.constant 0 : index
      %26 = vector.load %arg5[%c0_22, %c0_23, %c0_24] : memref<1x8x1xf32, #tpu.memory_space<vmem>>, vector<1x8x1xf32>
      tpu.vector_store %arg5[%c0_22, %c0_23, %c0_24], %25 {strides = array<i32>} : memref<1x8x1xf32, #tpu.memory_space<vmem>>, vector<1x8x1xf32>,
    } else {
    }
    %c0 = arith.constant 0 : index
    %c0_1 = arith.constant 0 : index
    %3 = vector.load %arg2[%c0, %c0_1] : memref<8x256xf32, #tpu.memory_space<vmem>>, vector<8x256xf32>
    %c0_2 = arith.constant 0 : index
    %c0_3 = arith.constant 0 : index
    %4 = vector.load %arg3[%c0_2, %c0_3] : memref<8x256xf32, #tpu.memory_space<vmem>>, vector<8x256xf32>
    %c0_4 = arith.constant 0 : index
    %c0_5 = arith.constant 0 : index
    %c0_6 = arith.constant 0 : index
    %5 = vector.load %arg4[%c0_4, %c0_5, %c0_6] : memref<1x8x1xf32, #tpu.memory_space<vmem>>, vector<1x8x1xf32>
    %6 = vector.shape_cast %5 : vector<1x8x1xf32> to vector<8x1xf32>
    %7 = arith.mulf %3, %4 : vector<8x256xf32>
    %cst = arith.constant dense<0.000000e+00> : vector<8xf32>
    %8 = vector.multi_reduction <add>, %7, %cst [1] : vector<8x256xf32> to vector<8xf32>
    %9 = vector.shape_cast %8 : vector<8xf32> to vector<8x1xf32>
    %10 = arith.addf %6, %9 : vector<8x1xf32>
    %c0_7 = arith.constant 0 : index
    %c0_8 = arith.constant 0 : index
    %c0_9 = arith.constant 0 : index
    %11 = vector.load %arg4[%c0_7, %c0_8, %c0_9] : memref<1x8x1xf32, #tpu.memory_space<vmem>>, vector<1x8x1xf32>
    %12 = vector.shape_cast %11 : vector<1x8x1xf32> to vector<8x1xf32>
    %13 = vector.shape_cast %10 : vector<8x1xf32> to vector<1x8x1xf32>
    tpu.vector_store %arg4[%c0_7, %c0_8, %c0_9], %13 {strides = array<i32>} : memref<1x8x1xf32, #tpu.memory_space<vmem>>, vector<1x8x1xf32>,
    %c0_10 = arith.constant 0 : index
    %c0_11 = arith.constant 0 : index
    %c0_12 = arith.constant 0 : index
    %14 = vector.load %arg5[%c0_10, %c0_11, %c0_12] : memref<1x8x1xf32, #tpu.memory_space<vmem>>, vector<1x8x1xf32>
    %15 = vector.shape_cast %14 : vector<1x8x1xf32> to vector<8x1xf32>
    %16 = arith.addf %3, %4 : vector<8x256xf32>
    %cst_13 = arith.constant dense<0.000000e+00> : vector<8xf32>
    %17 = vector.multi_reduction <add>, %16, %cst_13 [1] : vector<8x256xf32> to vector<8xf32>
    %18 = vector.shape_cast %17 : vector<8xf32> to vector<8x1xf32>
    %19 = arith.addf %15, %18 : vector<8x1xf32>
    %c0_14 = arith.constant 0 : index
    %c0_15 = arith.constant 0 : index
    %c0_16 = arith.constant 0 : index
    %20 = vector.load %arg5[%c0_14, %c0_15, %c0_16] : memref<1x8x1xf32, #tpu.memory_space<vmem>>, vector<1x8x1xf32>
    %21 = vector.shape_cast %20 : vector<1x8x1xf32> to vector<8x1xf32>
    %22 = vector.shape_cast %19 : vector<8x1xf32> to vector<1x8x1xf32>
    tpu.vector_store %arg5[%c0_14, %c0_15, %c0_16], %22 {strides = array<i32>} : memref<1x8x1xf32, #tpu.memory_space<vmem>>, vector<1x8x1xf32>,
    return
  }
  func.func @transform_0(%arg0: i32, %arg1: i32) -> (i32, i32) {
    %c1_i32 = arith.constant 1 : i32
    %0 = arith.muli %arg0, %c1_i32 : i32
    %1 = arith.addi %0, %arg1 : i32
    %c0_i32 = arith.constant 0 : i32
    %2 = arith.minsi %1, %c0_i32 : i32
    %c0_i32_0 = arith.constant 0 : i32
    %c0_i32_1 = arith.constant 0 : i32
    return %c0_i32_0, %2 : i32, i32
  }
  func.func @transform_1(%arg0: i32, %arg1: i32) -> (i32, i32) {
    %c1_i32 = arith.constant 1 : i32
    %0 = arith.muli %arg0, %c1_i32 : i32
    %1 = arith.addi %0, %arg1 : i32
    %c0_i32 = arith.constant 0 : i32
    %2 = arith.minsi %1, %c0_i32 : i32
    %c0_i32_0 = arith.constant 0 : i32
    %c0_i32_1 = arith.constant 0 : i32
    return %c0_i32_0, %2 : i32, i32
  }
  func.func @transform_2(%arg0: i32, %arg1: i32) -> (i32, i32, i32) {
    %c0_i32 = arith.constant 0 : i32
    %c0_i32_0 = arith.constant 0 : i32
    %c0_i32_1 = arith.constant 0 : i32
    return %arg0, %c0_i32, %c0_i32_0 : i32, i32, i32
  }
  func.func @transform_3(%arg0: i32, %arg1: i32) -> (i32, i32, i32) {
    %c0_i32 = arith.constant 0 : i32
    %c0_i32_0 = arith.constant 0 : i32
    %c0_i32_1 = arith.constant 0 : i32
    return %arg0, %c0_i32, %c0_i32_0 : i32, i32, i32
  }
}

</mosaic_0001>

<bundles_post_ra>
// kernel: tpu_custom_call.1
= control target key start
LH: loop header
LB: loop body
LE: loop exit
PB: predicated region body
PF: predicated region fallthrough
CT: control target
= control target key end

     0   :  { %9 = vsyncpa [#allocation3], 0  ;;  %s197_s0 = inlined_call_operand.hbm [shape: f32[8,256], index: 0, kind: input, shape index: {}]   ;;  %s198_s1 = inlined_call_operand.hbm [shape: f32[8,256], index: 1, kind: input, shape index: {}]   ;;  %s199_s2 = inlined_call_operand.vmem [shape: f32[1,8,1], index: 2, kind: output, shape index: {0}]   ;;  %s200_s3 = inlined_call_operand.vmem [shape: f32[1,8,1], index: 3, kind: output, shape index: {1}]  }
   0x1   :  { %10 = vsyncpa [#allocation5], 0  ;;  %s146_s12 = smov [#allocation2]   ;;  %s147_s14 = smov [#allocation4]  }
   0x2   :  { %s23_s13 = sshll.u32 %s146_s12, 4  ;;  %s39_s15 = sshll.u32 %s147_s14, 4  ;;  %s24_s13 = int_to_ptr.vmem [resolvable:$true] %s23_s13  ;;  %s40_s15 = int_to_ptr.vmem [resolvable:$true] %s39_s15 }
   0x3   :  { %s110_s16 = scalar_lea.vmem %s24_s13, 256  ;;  %p115_p1 = scmp.lt.s32.totalorder %s24_s13, %s24_s13 }
   0x4   :  { %p111_p0 = scmp.ne.s32.totalorder %s24_s13, %s110_s16  ;;  %p116_p2 = scmp.lt.s32.totalorder %s110_s16, %s110_s16 }
   0x6   :  { %p117_p3 = por %p116_p2, %p115_p1 }
   0x8   :  { %p118_p4 = pnand %p117_p3, %p111_p0 }
   0xa   :  { %121 = shalt.err (!%p118_p4)
}
   0xb   :  { %26 = dma.hbm_to_vmem [thread:$0]  %s197_s0, 256, %s24_s13, [#allocation3]  }
   0xc   :  { %s130_s19 = scalar_lea.vmem %s40_s15, 256  ;;  %p135_p6 = scmp.lt.s32.totalorder %s40_s15, %s40_s15 }
   0xd   :  { %p131_p5 = scmp.ne.s32.totalorder %s40_s15, %s130_s19  ;;  %p136_p7 = scmp.lt.s32.totalorder %s130_s19, %s130_s19 }
   0xf   :  { %p137_p8 = por %p136_p7, %p135_p6 }
  0x11   :  { %p138_p9 = pnand %p137_p8, %p131_p5 }
  0x13   :  { %141 = shalt.err (!%p138_p9)
}
  0x14   :  { %42 = dma.hbm_to_vmem [thread:$0]  %s198_s1, 256, %s40_s15, [#allocation5]  }
  0x15   :  { %142 = dma.done.wait [#allocation3], 256  }
  0x16   :  { %143 = vsyncadd [#allocation3], 4294967040 }
  0x17   :  { %144 = dma.done.wait [#allocation5], 256  }
  0x18   :  { %145 = vsyncadd [#allocation5], 4294967040  ;;  %vm61_vm0 = vcmask 7168   ;;  %v148_v0 = vmov 0.0   ;;  %v64_v1 = vld [vmem:[#allocation2] sm:$0xff]  ;;  %v65_v2 = vld [vmem:[#allocation2 + $0x8] sm:$0xff] }
  0x19   :  { %62 = vst.msk [vmem:[%s199_s2] sm:$0xff] %vm61_vm0, %v148_v0  ;;  %63 = vst.msk [vmem:[%s200_s3] sm:$0xff] %vm61_vm0, %v148_v0  ;;  %v66_v3 = vld [vmem:[#allocation4] sm:$0xff]  ;;  %v67_v4 = vld [vmem:[#allocation4 + $0x8] sm:$0xff] }
  0x1a   :  { %v69_v5 = vmul.f32 %v66_v3, %v64_v1  ;;  %v70_v6 = vmul.f32 %v67_v4, %v65_v2  ;;  %v78_v7 = vadd.f32 %v66_v3, %v64_v1  ;;  %v79_v8 = vadd.f32 %v67_v4, %v65_v2 }
  0x1c   :  { %v71_v9 = vadd.f32 %v70_v6, %v69_v5  ;;  %v80_v10 = vadd.f32 %v79_v8, %v78_v7 }
  0x1e   :  { %72 = vadd.xlane.f32.xlu0 %v71_v9 }
  0x20   :  { %v68_v11 = vld [vmem:[%s199_s2] sm:$0xff] }
  0x21   :  { %v77_v14 = vld [vmem:[%s200_s3] sm:$0xff] }
  0x22   :  { %81 = vadd.xlane.f32.xlu0 %v80_v10 }
  0xa7   :  { %v73_v12 = vpop.xlane.xlu0 %72 }
  0xa8   :  { %v74_v13 = vadd.f32 %v73_v12, %v68_v11 }
  0xaa   :  { %76 = vst.msk [vmem:[%s199_s2] sm:$0xff] %vm61_vm0, %v74_v13 }
  0xab   :  { %v82_v15 = vpop.xlane.xlu0 %81 }
  0xac   :  { %v83_v16 = vadd.f32 %v82_v15, %v77_v14 }
  0xae   :  { %84 = vst.msk [vmem:[%s200_s3] sm:$0xff] %vm61_vm0, %v83_v16 }
  0xaf   :  { %93 = vsyncpa [#allocation3], 1 }
  0xb0   :  { %94 = vsyncpa [#allocation5], 1 }

</bundles_post_ra>
